<compile_context>
chip_gen: v7x
topology: tpu7x:2x2x1
jax: 0.10.0
libtpu: 0.0.40
codegen_flags: <defaults>
</compile_context>

<pallas_src>
import functools
import math

import jax
import jax.numpy as jnp
from jax.experimental import pallas as pl
from jax.experimental.pallas import tpu as pltpu


def _make_kernel(m_valid, block_m):
    """Kernel body factory. m_valid / block_m are trace-time Python ints."""

    def kernel(act_ref, noise_ref, w1a_ref, w1b_ref, b1_ref,
               w2_ref, b2_ref, w3_ref, b3_ref, out_ref, dsum_ref):
        i = pl.program_id(0)

        act = act_ref[...]          # (3, block_m) raw actions, lanes = rows
        noise = noise_ref[...]      # (3, block_m) uniform[0,1) noise

        # ---- tiny MLP in transposed (feature, lanes) form --------------------
        # Linear(6,32): 1/std already folded into w1a, so
        #   x @ W1 == W1a_scaled^T @ act + W1b^T @ noise
        h1 = (jnp.dot(w1a_ref[...], act, preferred_element_type=jnp.float32)
              + jnp.dot(w1b_ref[...], noise, preferred_element_type=jnp.float32)
              + b1_ref[...])
        h1 = jnp.maximum(h1, 0.0)                           # (32, block_m)

        # Linear(32,32) + ReLU
        h2 = jnp.dot(w2_ref[...], h1, preferred_element_type=jnp.float32) + b2_ref[...]
        h2 = jnp.maximum(h2, 0.0)                           # (32, block_m)

        # Linear(32,3)
        d = jnp.dot(w3_ref[...], h2, preferred_element_type=jnp.float32) + b3_ref[...]  # (3, block_m)

        # un-normalized output; the global -mean(d) is applied in a trivial
        # second pass outside the kernel.  Lane-dense full-width store.
        out_ref[...] = act + d

        # per-tile partial sum of d over VALID columns only (mask zero-padded tail)
        col = jax.lax.broadcasted_iota(jnp.int32, (1, block_m), 1) + i * block_m
        valid = col < m_valid                               # (1, block_m)
        ps = jnp.sum(jnp.where(valid, d, 0.0))              # scalar
        dsum_ref[...] = jnp.full((1, 1, 128), ps, jnp.float32)

    return kernel


@functools.partial(jax.jit, static_argnames=("block_m",))
def action_sampler_forward(actions, noise, std_a, params, *, block_m=512):
    """actions, noise: (B, N, 3) f32; std_a: (3,) f32 (= stds['a']).

    Returns noisy_actions (B, N, 3) = actions + (MLP(concat(actions/std, noise)) - mean).
    """
    B, N, C = actions.shape
    assert C == 3
    M = B * N

    # lane-dense tile size: multiple of 128 lanes, capped at block_m
    bm = max(128, min(block_m, ((M + 127) // 128) * 128))
    num_tiles = (M + bm - 1) // bm
    m_pad = num_tiles * bm

    # transposed, lane-dense, zero-padded inputs: (3, m_pad), rows on lanes
    act_t = actions.reshape(M, 3).astype(jnp.float32).T
    act_t = jnp.pad(act_t, ((0, 0), (0, m_pad - M)))
    noise_t = noise.reshape(M, 3).astype(jnp.float32).T
    noise_t = jnp.pad(noise_t, ((0, 0), (0, m_pad - M)))

    w1, b1, w2, b2, w3, b3 = params
    inv_std = (1.0 / std_a.astype(jnp.float32)).reshape(3, 1)
    # fold 1/std into the "action" half of W1; transpose weights for the
    # (feature, lanes) layout used inside the kernel.
    w1a_t = (w1[:3, :] * inv_std).T          # (32, 3)
    w1b_t = w1[3:, :].T                      # (32, 3)
    w2_t = w2.T                              # (32, 32)
    w3_t = w3.T                              # (3, 32)
    b1_c = b1.reshape(32, 1)
    b2_c = b2.reshape(32, 1)
    b3_c = b3.reshape(3, 1)

    tile_spec = pl.BlockSpec((3, bm), lambda i: (0, i))
    const = lambda shape: pl.BlockSpec(shape, lambda i: (0, 0))

    out_shapes = (jax.ShapeDtypeStruct((3, m_pad), jnp.float32),
                  jax.ShapeDtypeStruct((num_tiles, 1, 128), jnp.float32))
    out_specs = (tile_spec,
                 pl.BlockSpec((1, 1, 128), lambda i: (i, 0, 0)))

    flops = 2 * M * (6 * 32 + 32 * 32 + 32 * 3)
    bytes_accessed = 3 * 3 * m_pad * 4 + num_tiles * 128 * 4 + 6 * 1024

    out_t, dsum = pl.pallas_call(
        _make_kernel(M, bm),
        out_shape=out_shapes,
        grid_spec=pltpu.PrefetchScalarGridSpec(
            num_scalar_prefetch=0,
            grid=(num_tiles,),
            in_specs=[
                tile_spec,               # actions tile (3, bm)
                tile_spec,               # noise tile   (3, bm)
                const((32, 3)),          # W1a^T (1/std folded)   — VMEM-resident
                const((32, 3)),          # W1b^T
                const((32, 1)),          # b1
                const((32, 32)),         # W2^T
                const((32, 1)),          # b2
                const((3, 32)),          # W3^T
                const((3, 1)),           # b3
            ],
            out_specs=out_specs,
        ),
        compiler_params=pltpu.CompilerParams(
            dimension_semantics=("parallel",)),
        cost_estimate=pl.CostEstimate(
            flops=flops, transcendentals=0, bytes_accessed=bytes_accessed),
    )(act_t, noise_t, w1a_t, w1b_t, b1_c, w2_t, b2_c, w3_t, b3_c)

    # second (trivial) pass: subtract the GLOBAL mean of d, drop padding, relayout.
    mean_d = jnp.sum(dsum[:, 0, 0]) / (M * 3)
    out = (out_t[:, :M] - mean_d).T.reshape(B, N, 3)
    return out


def init_params(key):
    """Deterministic init mimicking torch.nn.Linear defaults (U(-1/sqrt(fan_in), +))."""
    def linear(key, fan_in, fan_out):
        kw, kb = jax.random.split(key)
        bound = 1.0 / math.sqrt(fan_in)
        # stored as (fan_in, fan_out) so the reference does x @ W + b
        w = jax.random.uniform(kw, (fan_in, fan_out), jnp.float32, -bound, bound)
        b = jax.random.uniform(kb, (fan_out,), jnp.float32, -bound, bound)
        return w, b

    k1, k2, k3 = jax.random.split(key, 3)
    w1, b1 = linear(k1, 6, 32)
    w2, b2 = linear(k2, 32, 32)
    w3, b3 = linear(k3, 32, 3)
    return (w1, b1, w2, b2, w3, b3)


def reference_forward(actions, noise, std_a, params):
    """Pure-JAX reference of the PyTorch forward, given an explicit noise tensor."""
    w1, b1, w2, b2, w3, b3 = params
    B, N, _ = actions.shape
    hp = jax.lax.Precision.HIGHEST
    scaled = actions / std_a.reshape(1, 1, 3)
    x = jnp.concatenate([scaled, noise], axis=-1).reshape(-1, 6)
    h1 = jnp.maximum(jnp.dot(x, w1, precision=hp) + b1, 0.0)
    h2 = jnp.maximum(jnp.dot(h1, w2, precision=hp) + b2, 0.0)
    d = jnp.dot(h2, w3, precision=hp) + b3
    d = d - jnp.mean(d)
    return actions + d.reshape(B, N, 3)


if __name__ == "__main__":
    key = jax.random.PRNGKey(0)
    (k_params, k_act_a, k_part, k_act_b,
     k_noise_a, k_noise_b) = jax.random.split(key, 6)

    params = init_params(k_params)
    std_a = jnp.array([0.5, 1.0, 2.0], jnp.float32)          # stds['a']

    # (B, N): the module's small case, plus one spanning several grid tiles
    # (exercises multi-tile partial sums and tail-column masking).
    cases = [(2, 8, k_act_a, k_noise_a), (4, 400, k_act_b, k_noise_b)]
    for B, N, k_act, k_noise in cases:
        actions = jax.random.normal(k_act, (B, N, 3), jnp.float32)
        # particles are a forward() argument in PyTorch but unused by its math.
        particles = jax.random.normal(k_part, (B, N, 3), jnp.float32)  # noqa: F841
        noise = jax.random.uniform(k_noise, (B, N, 3), jnp.float32)    # torch.rand_like

        out = action_sampler_forward(actions, noise, std_a, params)
        out = jax.block_until_ready(out)

        ref = reference_forward(actions, noise, std_a, params)
        assert out.shape == (B, N, 3)
        assert jnp.allclose(out, ref, atol=1e-3, rtol=1e-3), \
            f"mismatch vs reference for B={B}, N={N}"

    print("KERNEL_OK")
</pallas_src>

<mosaic_0001>
module attributes {stable_mosaic.version = 11 : i64} {
  func.func @kernel(%arg0: i32, %arg1: memref<3x128xf32, #tpu.memory_space<vmem>>, %arg2: memref<3x128xf32, #tpu.memory_space<vmem>>, %arg3: memref<32x3xf32, #tpu.memory_space<vmem>>, %arg4: memref<32x3xf32, #tpu.memory_space<vmem>>, %arg5: memref<32x1xf32, #tpu.memory_space<vmem>>, %arg6: memref<32x32xf32, #tpu.memory_space<vmem>>, %arg7: memref<32x1xf32, #tpu.memory_space<vmem>>, %arg8: memref<3x32xf32, #tpu.memory_space<vmem>>, %arg9: memref<3x1xf32, #tpu.memory_space<vmem>>, %arg10: memref<3x128xf32, #tpu.memory_space<vmem>>, %arg11: memref<1x1x128xf32, #tpu.memory_space<vmem>>) attributes {dimension_semantics = [#tpu.dimension_semantics<parallel>], iteration_bounds = array<i64: 1>, scalar_prefetch = 0 : i64, scratch_operands = 0 : i64, tpu.core_type = #tpu.core_type<tc>, window_params = [{transform_indices = @transform_0, window_bounds = array<i64: 3, 128>}, {transform_indices = @transform_1, window_bounds = array<i64: 3, 128>}, {pipeline_mode = #tpu.pipeline_mode<synchronous>, transform_indices = @transform_2, window_bounds = array<i64: 32, 3>}, {pipeline_mode = #tpu.pipeline_mode<synchronous>, transform_indices = @transform_3, window_bounds = array<i64: 32, 3>}, {pipeline_mode = #tpu.pipeline_mode<synchronous>, transform_indices = @transform_4, window_bounds = array<i64: 32, 1>}, {pipeline_mode = #tpu.pipeline_mode<synchronous>, transform_indices = @transform_5, window_bounds = array<i64: 32, 32>}, {pipeline_mode = #tpu.pipeline_mode<synchronous>, transform_indices = @transform_6, window_bounds = array<i64: 32, 1>}, {pipeline_mode = #tpu.pipeline_mode<synchronous>, transform_indices = @transform_7, window_bounds = array<i64: 3, 32>}, {pipeline_mode = #tpu.pipeline_mode<synchronous>, transform_indices = @transform_8, window_bounds = array<i64: 3, 1>}, {transform_indices = @transform_9, window_bounds = array<i64: 3, 128>}, {transform_indices = @transform_10, window_bounds = array<i64: 1, 1, 128>}]} {
    %c0 = arith.constant 0 : index
    %c0_0 = arith.constant 0 : index
    %0 = vector.load %arg1[%c0, %c0_0] : memref<3x128xf32, #tpu.memory_space<vmem>>, vector<3x128xf32>
    %c0_1 = arith.constant 0 : index
    %c0_2 = arith.constant 0 : index
    %1 = vector.load %arg2[%c0_1, %c0_2] : memref<3x128xf32, #tpu.memory_space<vmem>>, vector<3x128xf32>
    %c0_3 = arith.constant 0 : index
    %c0_4 = arith.constant 0 : index
    %2 = vector.load %arg3[%c0_3, %c0_4] : memref<32x3xf32, #tpu.memory_space<vmem>>, vector<32x3xf32>
    %cst = arith.constant dense<0.000000e+00> : vector<32x128xf32>
    %3 = tpu.matmul %2, %0, %cst {dimension_numbers = #tpu.dot_dimension_numbers<[1], [0], [0], [1], [0, 0, 1, 1], [], []>} : vector<32x3xf32>, vector<3x128xf32>, vector<32x128xf32> -> vector<32x128xf32>
    %c0_5 = arith.constant 0 : index
    %c0_6 = arith.constant 0 : index
    %4 = vector.load %arg4[%c0_5, %c0_6] : memref<32x3xf32, #tpu.memory_space<vmem>>, vector<32x3xf32>
    %cst_7 = arith.constant dense<0.000000e+00> : vector<32x128xf32>
    %5 = tpu.matmul %4, %1, %cst_7 {dimension_numbers = #tpu.dot_dimension_numbers<[1], [0], [0], [1], [0, 0, 1, 1], [], []>} : vector<32x3xf32>, vector<3x128xf32>, vector<32x128xf32> -> vector<32x128xf32>
    %6 = arith.addf %3, %5 : vector<32x128xf32>
    %c0_8 = arith.constant 0 : index
    %c0_9 = arith.constant 0 : index
    %7 = vector.load %arg5[%c0_8, %c0_9] : memref<32x1xf32, #tpu.memory_space<vmem>>, vector<32x1xf32>
    %8 = vector.broadcast %7 : vector<32x1xf32> to vector<32x128xf32>
    %9 = arith.addf %6, %8 : vector<32x128xf32>
    %cst_10 = arith.constant 0.000000e+00 : f32
    %10 = vector.broadcast %cst_10 : f32 to vector<32x128xf32>
    %11 = arith.maximumf %9, %10 : vector<32x128xf32>
    %c0_11 = arith.constant 0 : index
    %c0_12 = arith.constant 0 : index
    %12 = vector.load %arg6[%c0_11, %c0_12] : memref<32x32xf32, #tpu.memory_space<vmem>>, vector<32x32xf32>
    %cst_13 = arith.constant dense<0.000000e+00> : vector<32x128xf32>
    %13 = tpu.matmul %12, %11, %cst_13 {dimension_numbers = #tpu.dot_dimension_numbers<[1], [0], [0], [1], [0, 0, 1, 1], [], []>} : vector<32x32xf32>, vector<32x128xf32>, vector<32x128xf32> -> vector<32x128xf32>
    %c0_14 = arith.constant 0 : index
    %c0_15 = arith.constant 0 : index
    %14 = vector.load %arg7[%c0_14, %c0_15] : memref<32x1xf32, #tpu.memory_space<vmem>>, vector<32x1xf32>
    %15 = vector.broadcast %14 : vector<32x1xf32> to vector<32x128xf32>
    %16 = arith.addf %13, %15 : vector<32x128xf32>
    %cst_16 = arith.constant 0.000000e+00 : f32
    %17 = vector.broadcast %cst_16 : f32 to vector<32x128xf32>
    %18 = arith.maximumf %16, %17 : vector<32x128xf32>
    %c0_17 = arith.constant 0 : index
    %c0_18 = arith.constant 0 : index
    %19 = vector.load %arg8[%c0_17, %c0_18] : memref<3x32xf32, #tpu.memory_space<vmem>>, vector<3x32xf32>
    %cst_19 = arith.constant dense<0.000000e+00> : vector<3x128xf32>
    %20 = tpu.matmul %19, %18, %cst_19 {dimension_numbers = #tpu.dot_dimension_numbers<[1], [0], [0], [1], [0, 0, 1, 1], [], []>} : vector<3x32xf32>, vector<32x128xf32>, vector<3x128xf32> -> vector<3x128xf32>
    %c0_20 = arith.constant 0 : index
    %c0_21 = arith.constant 0 : index
    %21 = vector.load %arg9[%c0_20, %c0_21] : memref<3x1xf32, #tpu.memory_space<vmem>>, vector<3x1xf32>
    %22 = vector.broadcast %21 : vector<3x1xf32> to vector<3x128xf32>
    %23 = arith.addf %20, %22 : vector<3x128xf32>
    %24 = arith.addf %0, %23 : vector<3x128xf32>
    %c0_22 = arith.constant 0 : index
    %c0_23 = arith.constant 0 : index
    %25 = vector.load %arg10[%c0_22, %c0_23] : memref<3x128xf32, #tpu.memory_space<vmem>>, vector<3x128xf32>
    tpu.vector_store %arg10[%c0_22, %c0_23], %24 {strides = array<i32>} : memref<3x128xf32, #tpu.memory_space<vmem>>, vector<3x128xf32>,
    %26 = tpu.iota {dimensions = array<i32: 1>} : vector<1x128xi32>
    %c128_i32 = arith.constant 128 : i32
    %27 = arith.muli %arg0, %c128_i32 : i32
    %28 = vector.broadcast %27 : i32 to vector<1x128xi32>
    %29 = arith.addi %26, %28 : vector<1x128xi32>
    %c16_i32 = arith.constant 16 : i32
    %30 = vector.broadcast %c16_i32 : i32 to vector<1x128xi32>
    %31 = arith.cmpi slt, %29, %30 : vector<1x128xi32>
    %cst_24 = arith.constant 0.000000e+00 : f32
    %32 = vector.shape_cast %31 : vector<1x128xi1> to vector<1x128xi1>
    %33 = vector.broadcast %32 : vector<1x128xi1> to vector<3x128xi1>
    %34 = vector.broadcast %cst_24 : f32 to vector<3x128xf32>
    %35 = arith.select %33, %23, %34 : vector<3x128xi1>, vector<3x128xf32>
    %36 = vector.shape_cast %35 : vector<3x128xf32> to vector<1x3x128xf32>
    %cst_25 = arith.constant dense<0.000000e+00> : vector<1xf32>
    %37 = vector.multi_reduction <add>, %36, %cst_25 [1, 2] : vector<1x3x128xf32> to vector<1xf32>
    %38 = vector.shape_cast %37 : vector<1xf32> to vector<1x1x1xf32>
    %39 = vector.extract %38[0, 0, 0] : f32 from vector<1x1x1xf32>
    %40 = vector.broadcast %39 : f32 to vector<1x1x128xf32>
    %c0_26 = arith.constant 0 : index
    %c0_27 = arith.constant 0 : index
    %c0_28 = arith.constant 0 : index
    %41 = vector.load %arg11[%c0_26, %c0_27, %c0_28] : memref<1x1x128xf32, #tpu.memory_space<vmem>>, vector<1x1x128xf32>
    tpu.vector_store %arg11[%c0_26, %c0_27, %c0_28], %40 {strides = array<i32>} : memref<1x1x128xf32, #tpu.memory_space<vmem>>, vector<1x1x128xf32>,
    return
  }
  func.func @transform_0(%arg0: i32) -> (i32, i32) {
    %c0_i32 = arith.constant 0 : i32
    %c0_i32_0 = arith.constant 0 : i32
    return %c0_i32, %arg0 : i32, i32
  }
  func.func @transform_1(%arg0: i32) -> (i32, i32) {
    %c0_i32 = arith.constant 0 : i32
    %c0_i32_0 = arith.constant 0 : i32
    return %c0_i32, %arg0 : i32, i32
  }
  func.func @transform_2(%arg0: i32) -> (i32, i32) {
    %c0_i32 = arith.constant 0 : i32
    %c0_i32_0 = arith.constant 0 : i32
    %c0_i32_1 = arith.constant 0 : i32
    return %c0_i32, %c0_i32_0 : i32, i32
  }
  func.func @transform_3(%arg0: i32) -> (i32, i32) {
    %c0_i32 = arith.constant 0 : i32
    %c0_i32_0 = arith.constant 0 : i32
    %c0_i32_1 = arith.constant 0 : i32
    return %c0_i32, %c0_i32_0 : i32, i32
  }
  func.func @transform_4(%arg0: i32) -> (i32, i32) {
    %c0_i32 = arith.constant 0 : i32
    %c0_i32_0 = arith.constant 0 : i32
    %c0_i32_1 = arith.constant 0 : i32
    return %c0_i32, %c0_i32_0 : i32, i32
  }
  func.func @transform_5(%arg0: i32) -> (i32, i32) {
    %c0_i32 = arith.constant 0 : i32
    %c0_i32_0 = arith.constant 0 : i32
    %c0_i32_1 = arith.constant 0 : i32
    return %c0_i32, %c0_i32_0 : i32, i32
  }
  func.func @transform_6(%arg0: i32) -> (i32, i32) {
    %c0_i32 = arith.constant 0 : i32
    %c0_i32_0 = arith.constant 0 : i32
    %c0_i32_1 = arith.constant 0 : i32
    return %c0_i32, %c0_i32_0 : i32, i32
  }
  func.func @transform_7(%arg0: i32) -> (i32, i32) {
    %c0_i32 = arith.constant 0 : i32
    %c0_i32_0 = arith.constant 0 : i32
    %c0_i32_1 = arith.constant 0 : i32
    return %c0_i32, %c0_i32_0 : i32, i32
  }
  func.func @transform_8(%arg0: i32) -> (i32, i32) {
    %c0_i32 = arith.constant 0 : i32
    %c0_i32_0 = arith.constant 0 : i32
    %c0_i32_1 = arith.constant 0 : i32
    return %c0_i32, %c0_i32_0 : i32, i32
  }
  func.func @transform_9(%arg0: i32) -> (i32, i32) {
    %c0_i32 = arith.constant 0 : i32
    %c0_i32_0 = arith.constant 0 : i32
    return %c0_i32, %arg0 : i32, i32
  }
  func.func @transform_10(%arg0: i32) -> (i32, i32, i32) {
    %c0_i32 = arith.constant 0 : i32
    %c0_i32_0 = arith.constant 0 : i32
    %c0_i32_1 = arith.constant 0 : i32
    return %arg0, %c0_i32, %c0_i32_0 : i32, i32, i32
  }
}

</mosaic_0001>

<bundles_post_ra>
// kernel: action_sampler_forward.1
= control target key start
LH: loop header
LB: loop body
LE: loop exit
PB: predicated region body
PF: predicated region fallthrough
CT: control target
= control target key end

     0   :  { %vm57_vm0 = vcmask 1042432   ;;  %vm44_vm1 = vcmask 23552   ;;  %v624_v3 = vmov 0   ;;  %vm306_vm2 = vcmask 261120   ;;  %s784_s1 = inlined_call_operand.vmem [shape: f32[3,128], index: 1, kind: input, shape index: {}]   ;;  %s785_s3 = inlined_call_operand.vmem [shape: f32[32,3], index: 3, kind: input, shape index: {}]   ;;  %s786_s0 = inlined_call_operand.vmem [shape: f32[3,128], index: 0, kind: input, shape index: {}]   ;;  %s787_s4 = inlined_call_operand.vmem [shape: f32[32,1], index: 4, kind: input, shape index: {}]   ;;  %s788_s2 = inlined_call_operand.vmem [shape: f32[32,3], index: 2, kind: input, shape index: {}]   ;;  %s789_s6 = inlined_call_operand.vmem [shape: f32[32,1], index: 6, kind: input, shape index: {}]   ;;  %s790_s8 = inlined_call_operand.vmem [shape: f32[3,1], index: 8, kind: input, shape index: {}]   ;;  %s791_s5 = inlined_call_operand.vmem [shape: f32[32,32], index: 5, kind: input, shape index: {}]   ;;  %s792_s7 = inlined_call_operand.vmem [shape: f32[3,32], index: 7, kind: input, shape index: {}]   ;;  %s793_s9 = inlined_call_operand.vmem [shape: f32[3,128], index: 9, kind: output, shape index: {0}]   ;;  %s794_s10 = inlined_call_operand.vmem [shape: f32[1,1,128], index: 10, kind: output, shape index: {1}]  }
   0x1   :  { %v35_v0 = vld [vmem:[%s784_s1] sm:$0x7]  ;;  %v41_v2 = vld [vmem:[%s785_s3 + $0x8] sm:$0xff]  ;;  %622 = vset.pattern.permute.xlu0 %v624_v3  ;;  %623 = vset.pattern.permute.xlu1 %v624_v3  ;;  %v42_v5 = vld [vmem:[%s785_s3 + $0x10] sm:$0xff]  ;;  %v625_v42 = vmov 0.0|0.0   ;;  %vm626_vm3 = vmmov 0   ;;  %v490_v63 = vlaneseq }
   0x2   :  { %v40_v1 = vld [vmem:[%s785_s3] sm:$0xff]  ;;  %557 = vmatprep.subr.msk.mxu0 %vm57_vm0, %v35_v0  ;;  %v43_v7 = vld [vmem:[%s785_s3 + $0x18] sm:$0xff]  ;;  %v248_v8 = vld [vmem:[%s787_s4 + $0x10] sm:$0xff]  ;;  %v627_v43 = vmov 0.0  }
   0x3   :  { %559 = vmatprep.mubr.msk.f32.mxu0 %vm44_vm1, %v40_v1  ;;  %v697_v4 = vld [vmem:[%s786_s0] sm:$0x7]  ;;  %558 = vmatpush3.msk.msra.mxu0 %vm57_vm0, %v35_v0  ;;  %v247_v10 = vld [vmem:[%s787_s4 + $0x8] sm:$0xff]  ;;  %v249_v11 = vld [vmem:[%s787_s4 + $0x18] sm:$0xff]  ;;  %v491_v0 = vand.u32 127, %v490_v63 }
   0x4   :  { %560 = vmatmul.mubr.msk.f32.vlgmr.msra.gmra.mrb[0].mxu0 %vm44_vm1, %v41_v2  ;;  %565 = vmatprep.subr.msk.mxu0 %vm57_vm0, %v697_v4  ;;  %v246_v6 = vld [vmem:[%s787_s4] sm:$0xff]  ;;  %v37_v12 = vld [vmem:[%s788_s2 + $0x8] sm:$0xff]  ;;  %v38_v13 = vld [vmem:[%s788_s2 + $0x10] sm:$0xff] }
   0x5   :  { %566 = vmatpush3.msk.msra.mxu0 %vm57_vm0, %v697_v4  ;;  %562 = vmatprep.mubr.msk.f32.mxu0 %vm44_vm1, %v42_v5  ;;  %v36_v9 = vld [vmem:[%s788_s2] sm:$0xff]  ;;  %v283_v15 = vld [vmem:[%s789_s6 + $0x8] sm:$0xff]  ;;  %v39_v16 = vld [vmem:[%s788_s2 + $0x18] sm:$0xff]  ;;  %vm495_vm4 = vcmp.lt.s32.totalorder %v491_v0, 16 }
   0x6   :  { %252 = vperm.xlu0 %622, %v246_v6   ;;  %262 = vperm.xlu1 %623, %v248_v8   ;;  %v282_v14 = vld [vmem:[%s789_s6] sm:$0xff]  ;;  %v284_v17 = vld [vmem:[%s789_s6 + $0x10] sm:$0xff]  ;;  %v285_v18 = vld [vmem:[%s789_s6 + $0x18] sm:$0xff] }
   0x7   :  { %v409_v19 = vld [vmem:[%s790_s8] sm:$0x7]  ;;  %v279_v39 = vld [vmem:[%s791_s5 + $0x8] sm:$0xff]  ;;  %v280_v40 = vld [vmem:[%s791_s5 + $0x10] sm:$0xff] }
   0x8   :  { %563 = vmatmul.mubr.msk.f32.gmra.mrb[2].mxu0 %vm44_vm1, %v43_v7  ;;  %v278_v20 = vld [vmem:[%s791_s5] sm:$0xff]  ;;  %v281_v41 = vld [vmem:[%s791_s5 + $0x18] sm:$0xff] }
   0x9   :  { %567 = vmatprep.mubr.msk.f32.mxu0 %vm44_vm1, %v36_v9  ;;  %581 = vmatprep.mubr.msk.f32.mxu1 %vm306_vm2, %v278_v20  ;;  %v408_v62 = vld [vmem:[%s792_s7] sm:$0x7] }
   0xa   :  { %257 = vperm.xlu0 %622, %v247_v10   ;;  %267 = vperm.xlu1 %623, %v249_v11  }
   0xc   :  { %568 = vmatmul.mubr.msk.f32.vlgmr.msra.gmra.mrb[0].mxu0 %vm44_vm1, %v37_v12 }
   0xd   :  { %570 = vmatprep.mubr.msk.f32.mxu0 %vm44_vm1, %v38_v13 }
   0xe   :  { %288 = vperm.xlu0 %622, %v282_v14   ;;  %293 = vperm.xlu1 %623, %v283_v15  }
  0x10   :  { %571 = vmatmul.mubr.msk.f32.gmra.mrb[2].mxu0 %vm44_vm1, %v39_v16 }
  0x12   :  { %298 = vperm.xlu0 %622, %v284_v17   ;;  %303 = vperm.xlu1 %623, %v285_v18  }
  0x16   :  { %412 = vperm.xlu0 %622, %v409_v19  }
  0x85   :  { %v253_v21 = vpop.permute.xlu0 %252  ;;  %v263_v22 = vpop.permute.xlu1 %262 }
  0x89   :  { %v258_v23 = vpop.permute.xlu0 %257  ;;  %v268_v29 = vpop.permute.xlu1 %267 }
  0x8d   :  { %v294_v44 = vpop.permute.xlu1 %293  ;;  %v289_v45 = vpop.permute.xlu0 %288 }
  0x91   :  { %v304_v51 = vpop.permute.xlu1 %303  ;;  %v299_v54 = vpop.permute.xlu0 %298 }
  0x95   :  { %v413_v1 = vpop.permute.xlu0 %412 }
  0xdf   :  { %v569_v24 = vpop.f32.mrb[0].mxu0 }
  0xe0   :  { %v271_v25 = vadd.f32 %v569_v24, %v258_v23  ;;  %v227_v26 = vpop.f32.mrb[1].mxu0 }
  0xe1   :  { %v270_v27 = vadd.f32 %v253_v21, %v227_v26 }
  0xe2   :  { %v275_v28 = vmax.f32 %v271_v25, 0.0 }
  0xe3   :  { %v274_v30 = vmax.f32 %v270_v27, 0.0  ;;  %v572_v31 = vpop.f32.mrb[2].mxu0 }
  0xe4   :  { %v273_v32 = vadd.f32 %v572_v31, %v268_v29  ;;  %v237_v33 = vpop.f32.mrb[3].mxu0 }
  0xe5   :  { %v272_v34 = vadd.f32 %v263_v22, %v237_v33  ;;  %v598_v35 = vpack.c.bf16 %v275_v28, %v274_v30 }
  0xe6   :  { %v277_v36 = vmax.f32 %v273_v32, 0.0 }
  0xe7   :  { %v276_v37 = vmax.f32 %v272_v34, 0.0  ;;  %599 = vmatprep.subr.bf16.mxu1 %v598_v35 }
  0xe8   :  { %601 = vmatpush3.bf16.msra.mxu1 %v598_v35 }
  0xe9   :  { %v602_v38 = vpack.c.bf16 %v277_v36, %v276_v37 }
  0xeb   :  { %603 = vmatprep.subr.bf16.mxu1 %v602_v38 }
  0xec   :  { %605 = vmatpush3.bf16.msra.mxu1 %v602_v38 }
  0xed   :  { %606 = vmatprep.subr.bf16.mxu1 %v625_v42 }
  0xef   :  { %582 = vmatmul.mubr.msk.f32.vlgmr.msra.gmra.mrb[0].mxu1 %vm306_vm2, %v279_v39 }
  0xf0   :  { %584 = vmatprep.mubr.msk.f32.mxu1 %vm306_vm2, %v280_v40 }
  0xf3   :  { %585 = vmatmul.mubr.msk.f32.gmra.mrb[2].mxu1 %vm306_vm2, %v281_v41 }
  0xf4   :  { %595 = vmatprep.mubr.msk.f32.mxu1 %vm626_vm3, %v627_v43 }
 0x1c2   :  { %v583_v46 = vpop.f32.mrb[0].mxu1 }
 0x1c3   :  { %v391_v47 = vadd.f32 %v583_v46, %v294_v44  ;;  %v385_v48 = vpop.f32.mrb[1].mxu1 }
 0x1c4   :  { %v386_v49 = vadd.f32 %v385_v48, %v289_v45 }
 0x1c5   :  { %v405_v50 = vmax.f32 %v391_v47, 0.0 }
 0x1c6   :  { %v404_v52 = vmax.f32 %v386_v49, 0.0  ;;  %v586_v53 = vpop.f32.mrb[2].mxu1 }
 0x1c7   :  { %v401_v55 = vadd.f32 %v586_v53, %v304_v51  ;;  %v395_v56 = vpop.f32.mrb[3].mxu1 }
 0x1c8   :  { %v607_v57 = vpack.c.bf16 %v405_v50, %v404_v52  ;;  %v396_v58 = vadd.f32 %v395_v56, %v299_v54 }
 0x1c9   :  { %v407_v59 = vmax.f32 %v401_v55, 0.0 }
 0x1ca   :  { %v406_v60 = vmax.f32 %v396_v58, 0.0  ;;  %608 = vmatpush3.bf16.msra.mxu1 %v607_v57 }
 0x1cb   :  { %609 = vmatprep.subr.bf16.mxu1 %v625_v42 }
 0x1cc   :  { %v610_v61 = vpack.c.bf16 %v407_v59, %v406_v60 }
 0x1ce   :  { %611 = vmatpush3.bf16.msra.mxu1 %v610_v61 }
 0x1d1   :  { %596 = vmatmul.mubr.msk.f32.vlgmr.msra.gmra.mrb[4].mxu1 %vm306_vm2, %v408_v62 }
 0x2a4   :  { %v484_v2 = vpop.f32.mrb[4].mxu1 }
 0x2a5   :  { %v485_v3 = vadd.f32 %v484_v2, %v413_v1  ;;  %v597_v5 = vpop.f32.mrb[5].mxu1 }
 0x2a7   :  { %v488_v6 = vadd.f32 %v485_v3, %v697_v4  ;;  %v498_v7 = vsel %vm495_vm4, %v485_v3, 0.0 }
 0x2a8   :  { %v499_v8 = vsel %vm57_vm0, %v498_v7, 0.0 }
 0x2a9   :  { %489 = vst [vmem:[%s793_s9] sm:$0x7] %v488_v6  ;;  %500 = vadd.xlane.f32.xlu1 %v499_v8 }
 0x336   :  { %v501_v9 = vpop.xlane.xlu1 %500 }
 0x337   :  { %v502_v10 = vrot.slane %v501_v9, 4 }
 0x339   :  { %v503_v11 = vadd.f32 %v502_v10, %v501_v9 }
 0x33b   :  { %v504_v12 = vrot.slane %v503_v11, 2 }
 0x33d   :  { %v505_v13 = vadd.f32 %v504_v12, %v503_v11 }
 0x33f   :  { %v506_v14 = vrot.slane %v505_v13, 1 }
 0x341   :  { %v507_v15 = vadd.f32 %v506_v14, %v505_v13 }
 0x343   :  { %616 = vpush %v507_v15 }
 0x374   :  { %s617_s7 = spop %616 }
 0x375   :  { %v509_v16 = vstv %s617_s7 }
 0x376   :  { %510 = vst [vmem:[%s794_s10] sm:$0x1] %v509_v16 }

</bundles_post_ra>
